<compile_context>
chip_gen: v5e
topology: v5e:2x2
jax: 0.10.0
libtpu: 0.0.40
codegen_flags: <defaults>
</compile_context>

<pallas_src>
import functools

import jax
import jax.numpy as jnp
import numpy as np
from jax import lax
from jax.experimental import pallas as pl
from jax.experimental.pallas import tpu as pltpu

BN_EPS = 1e-5
_LANE = 128
MM_DTYPE = jnp.bfloat16           # MXU-native operand dtype on v5e/v6e/v7x
VMEM_LIMIT_BYTES = 64 * 1024 * 1024


def _round_up(x, m):
    return ((x + m - 1) // m) * m


def _sublane(dtype):
    # bf16 packs 2 rows per sublane -> (16,128) min tile; f32 -> (8,128).
    return 16 if jnp.dtype(dtype).itemsize == 2 else 8


def _pad2d(x, rows, cols):
    return jnp.pad(x, ((0, rows - x.shape[0]), (0, cols - x.shape[1])))


def _vmem():
    return pl.BlockSpec(memory_space=pltpu.MemorySpace.VMEM)


def _smem():
    return pl.BlockSpec(memory_space=pltpu.MemorySpace.SMEM)


def _cparams():
    return pltpu.CompilerParams(vmem_limit_bytes=VMEM_LIMIT_BYTES)


# ---------------------------------------------------------------------------
# Kernel 1: 'sum' feature fusion as ONE MXU matmul:  [S || E] @ [Ws ; We] + (bs + be)
# ---------------------------------------------------------------------------
def _fusion_kernel(feat_ref, wcat_ref, bcat_ref, emb_ref):
    emb_ref[...] = (jnp.dot(feat_ref[...], wcat_ref[...],
                            preferred_element_type=jnp.float32)
                    + bcat_ref[...])


# ---------------------------------------------------------------------------
# Kernel 2: 3-layer MLP with train-mode BatchNorm (folded to scale/shift) + sigmoid.
# n_pairs arrives as a runtime SMEM scalar (inv_n + padded-row mask derived in-kernel).
# ---------------------------------------------------------------------------
def _mlp_kernel(npairs_ref, drug_ref, w1_ref, g1_ref, bt1_ref,
                w2_ref, g2_ref, bt2_ref, w3_ref, b3_ref, pred_ref):
    f32 = jnp.float32
    mm_dtype = drug_ref.dtype

    n = npairs_ref[0]
    inv_n = 1.0 / n.astype(f32)
    rows = lax.broadcasted_iota(jnp.int32, (drug_ref.shape[0], 1), 0)
    mask = (rows < n).astype(f32)          # exclude zero-padded pair rows from BN stats

    def bn_relu(h, gamma, beta):
        # PyTorch BatchNorm1d in training mode (biased batch stats), folded to
        # scale/shift.  rsqrt goes to the EUP slot; everything stays f32.
        mu = jnp.sum(h * mask, axis=0, keepdims=True) * inv_n
        d = h - mu
        var = jnp.sum(d * d * mask, axis=0, keepdims=True) * inv_n
        scale = gamma * lax.rsqrt(var + BN_EPS)
        shift = beta - mu * scale
        return jnp.maximum(h * scale + shift, 0.0)

    # layer1: single K = 2*ed_p MXU matmul against the packed w1 (b1 dropped: cancelled by BN)
    h = jnp.dot(drug_ref[...], w1_ref[...], preferred_element_type=f32)
    h = bn_relu(h, g1_ref[...], bt1_ref[...])

    # layer2 (b2 dropped: cancelled by BN); cast to mm_dtype only at the MXU boundary
    h = jnp.dot(h.astype(mm_dtype), w2_ref[...], preferred_element_type=f32)
    h = bn_relu(h, g2_ref[...], bt2_ref[...])

    # layer3 + sigmoid (multi_type == 'False'); output lane-padded to 128 -> unmasked store
    logits = (jnp.dot(h.astype(mm_dtype), w3_ref[...], preferred_element_type=f32)
              + b3_ref[...])
    pred_ref[...] = jax.nn.sigmoid(logits)


# ---------------------------------------------------------------------------
# Parameter init (mimics nn.Linear default uniform init; b1/b2 kept so the pure-JAX
# reference matches PyTorch exactly — the kernel provably drops them).
# ---------------------------------------------------------------------------
def _linear_params(key, in_dim, out_dim):
    k_w, k_b = jax.random.split(key)
    bound = 1.0 / np.sqrt(in_dim)
    w = jax.random.uniform(k_w, (in_dim, out_dim), jnp.float32, -bound, bound)
    b = jax.random.uniform(k_b, (1, out_dim), jnp.float32, -bound, bound)
    return w, b


def init_params(key, structure_dim, entity_dim, n_hidden_1, n_hidden_2, out_dim):
    keys = jax.random.split(key, 5)
    p = {}
    p["ws"], p["bs"] = _linear_params(keys[0], structure_dim, entity_dim)   # W_s
    p["we"], p["be"] = _linear_params(keys[1], entity_dim, entity_dim)      # W_e
    all_embedding_dim = entity_dim * 2                                      # 'sum' fusion
    p["w1"], p["b1"] = _linear_params(keys[2], all_embedding_dim, n_hidden_1)
    p["w2"], p["b2"] = _linear_params(keys[3], n_hidden_1, n_hidden_2)
    p["w3"], p["b3"] = _linear_params(keys[4], n_hidden_2, out_dim)
    p["g1"], p["bt1"] = jnp.ones((1, n_hidden_1), jnp.float32), jnp.zeros((1, n_hidden_1), jnp.float32)
    p["g2"], p["bt2"] = jnp.ones((1, n_hidden_2), jnp.float32), jnp.zeros((1, n_hidden_2), jnp.float32)
    return p


def make_fused_params(params, structure_dim, entity_dim, n_hidden_1, n_hidden_2, out_dim,
                      mm_dtype=MM_DTYPE):
    """One-time host-side prep: stack fusion weights, pack w1 for the padded concat
    layout, drop BN-cancelled biases, zero-pad to (8/16,128)-friendly shapes and
    pre-cast every MXU weight to mm_dtype (bf16 by default)."""
    ed_p = _round_up(entity_dim, _LANE)
    h1_p = _round_up(n_hidden_1, _LANE)
    h2_p = _round_up(n_hidden_2, _LANE)
    od_p = _round_up(out_dim, _LANE)
    fd = structure_dim + entity_dim
    fd_p = _round_up(fd, _LANE)

    w_cat = jnp.concatenate([params["ws"], params["we"]], axis=0)   # (fd, entity_dim)
    b_cat = params["bs"] + params["be"]                             # (1, entity_dim)

    # Layer-1 packed weight: row blocks aligned with drug_data = [drug1_pad || drug2_pad]
    # (each half lane-padded to ed_p) -> a single K = 2*ed_p matmul.
    w1a = _pad2d(params["w1"][:entity_dim], ed_p, h1_p)
    w1b = _pad2d(params["w1"][entity_dim:], ed_p, h1_p)
    w1_packed = jnp.concatenate([w1a, w1b], axis=0)                 # (2*ed_p, h1_p)

    fp = {
        # MXU operands: pre-cast once on the host
        "wcat": _pad2d(w_cat, fd_p, ed_p).astype(mm_dtype),
        "w1p": w1_packed.astype(mm_dtype),
        "w2": _pad2d(params["w2"], h1_p, h2_p).astype(mm_dtype),
        "w3": _pad2d(params["w3"], h2_p, od_p).astype(mm_dtype),
        # bias / BN params stay f32 (all elementwise math is f32)
        "bcat": _pad2d(b_cat, 1, ed_p),
        "g1": _pad2d(params["g1"], 1, h1_p),
        "bt1": _pad2d(params["bt1"], 1, h1_p),
        "g2": _pad2d(params["g2"], 1, h2_p),
        "bt2": _pad2d(params["bt2"], 1, h2_p),
        "b3": _pad2d(params["b3"], 1, od_p),
    }
    dims = dict(structure_dim=structure_dim, entity_dim=entity_dim, out_dim=out_dim,
                fd=fd, fd_p=fd_p, ed_p=ed_p, h1_p=h1_p, h2_p=h2_p, od_p=od_p,
                mm_dtype=mm_dtype)
    return fp, dims


# ---------------------------------------------------------------------------
# Full forward: GCNModel('predict', ...) for fusion_type='sum', multi_type='False'
# ---------------------------------------------------------------------------
def gcn_predict(fused_params, dims, structure_pre_embed, entity_pre_embed, test_data):
    mm_dtype = dims["mm_dtype"]
    sub = _sublane(mm_dtype)
    n_drugs = structure_pre_embed.shape[0]
    n_pairs = test_data.shape[0]
    nd_p = _round_up(n_drugs, sub)
    np_p = _round_up(n_pairs, sub)

    # --- kernel 1: 'sum' fusion (all_embed is a required model output anyway)
    feat = jnp.concatenate([structure_pre_embed, entity_pre_embed], axis=1)
    feat = _pad2d(feat, nd_p, dims["fd_p"]).astype(mm_dtype)
    all_embed = pl.pallas_call(
        _fusion_kernel,
        out_shape=jax.ShapeDtypeStruct((nd_p, dims["ed_p"]), jnp.float32),
        in_specs=[_vmem()] * 3,
        out_specs=_vmem(),
        compiler_params=_cparams(),
    )(feat, fused_params["wcat"], fused_params["bcat"])

    # --- real row gather: O(n_pairs * ed) bytes, zero MXU / one-hot work.
    #     drug_data is a lane-dense (np_p, 2*ed_p) tile feeding ONE K=2*ed_p matmul.
    idx = test_data.astype(jnp.int32)
    drug_data = jnp.concatenate([all_embed[idx[:, 0]], all_embed[idx[:, 1]]], axis=1)
    drug_data = jnp.pad(drug_data, ((0, np_p - n_pairs), (0, 0))).astype(mm_dtype)
    n_pairs_arr = jnp.asarray([n_pairs], jnp.int32)     # runtime SMEM scalar

    # --- kernel 2: MLP + train-mode BN + sigmoid
    pred_p = pl.pallas_call(
        _mlp_kernel,
        out_shape=jax.ShapeDtypeStruct((np_p, dims["od_p"]), jnp.float32),
        in_specs=[_smem()] + [_vmem()] * 9,
        out_specs=_vmem(),
        compiler_params=_cparams(),
    )(n_pairs_arr, drug_data,
      fused_params["w1p"], fused_params["g1"], fused_params["bt1"],
      fused_params["w2"], fused_params["g2"], fused_params["bt2"],
      fused_params["w3"], fused_params["b3"])

    pred = pred_p[:n_pairs, :dims["out_dim"]]
    return pred, all_embed[:n_drugs, :dims["entity_dim"]]


# Pure-JAX reference (exactly the PyTorch math: separate fusion matmuls, real concat,
# biases b1/b2 included) for numerical sanity checks.
def gcn_predict_ref(params, structure_pre_embed, entity_pre_embed, test_data):
    all_embed = (structure_pre_embed @ params["ws"] + params["bs"]
                 + entity_pre_embed @ params["we"] + params["be"])
    drug_data = jnp.concatenate([all_embed[test_data[:, 0]], all_embed[test_data[:, 1]]], axis=1)

    def bn(h, g, b):
        mu = jnp.mean(h, axis=0, keepdims=True)
        var = jnp.mean((h - mu) ** 2, axis=0, keepdims=True)
        return (h - mu) * lax.rsqrt(var + BN_EPS) * g + b

    h = jnp.maximum(bn(drug_data @ params["w1"] + params["b1"], params["g1"], params["bt1"]), 0.0)
    h = jnp.maximum(bn(h @ params["w2"] + params["b2"], params["g2"], params["bt2"]), 0.0)
    h = h @ params["w3"] + params["b3"]
    return jax.nn.sigmoid(h), all_embed


if __name__ == "__main__":
    # Small shapes consistent with the module's constructor.
    n_approved_drug = 16   # drugs with structure embeddings
    structure_dim = 48     # args.structure_dim
    entity_dim = 32        # args.entity_dim
    n_hidden_1 = 64        # args.n_hidden_1
    n_hidden_2 = 32        # args.n_hidden_2
    out_dim = 2            # args.out_dim
    n_pairs = 8            # number of drug-drug test pairs

    key = jax.random.PRNGKey(0)
    k_p, k_s, k_e, k_t = jax.random.split(key, 4)

    params = init_params(k_p, structure_dim, entity_dim, n_hidden_1, n_hidden_2, out_dim)
    structure_pre_embed = jax.random.normal(k_s, (n_approved_drug, structure_dim), jnp.float32)
    entity_pre_embed = jax.random.normal(k_e, (n_approved_drug, entity_dim), jnp.float32)
    test_data = jax.random.randint(k_t, (n_pairs, 2), 0, n_approved_drug, jnp.int32)

    pred_ref, all_embed_ref = gcn_predict_ref(params, structure_pre_embed, entity_pre_embed, test_data)

    # --- strict validation path: f32 MXU operands, must match the PyTorch math to 1e-4
    fp32, dims32 = make_fused_params(params, structure_dim, entity_dim,
                                     n_hidden_1, n_hidden_2, out_dim, mm_dtype=jnp.float32)
    run_f32 = jax.jit(lambda s, e, t: gcn_predict(fp32, dims32, s, e, t))
    pred32, emb32 = run_f32(structure_pre_embed, entity_pre_embed, test_data)
    pred32 = jax.block_until_ready(pred32)
    emb32 = jax.block_until_ready(emb32)
    np.testing.assert_allclose(np.asarray(emb32), np.asarray(all_embed_ref), atol=1e-4, rtol=1e-4)
    np.testing.assert_allclose(np.asarray(pred32), np.asarray(pred_ref), atol=1e-4, rtol=1e-4)

    # --- production path: bf16 MXU operands (f32 accumulation + f32 BN/ReLU/sigmoid),
    #     validated against the f32 reference at bf16-appropriate tolerance.
    fpbf, dimsbf = make_fused_params(params, structure_dim, entity_dim,
                                     n_hidden_1, n_hidden_2, out_dim, mm_dtype=jnp.bfloat16)
    run_bf16 = jax.jit(lambda s, e, t: gcn_predict(fpbf, dimsbf, s, e, t))
    predbf, embbf = run_bf16(structure_pre_embed, entity_pre_embed, test_data)
    predbf = jax.block_until_ready(predbf)
    embbf = jax.block_until_ready(embbf)
    np.testing.assert_allclose(np.asarray(embbf), np.asarray(all_embed_ref), atol=5e-2, rtol=5e-2)
    np.testing.assert_allclose(np.asarray(predbf), np.asarray(pred_ref), atol=5e-2, rtol=5e-2)

    print("KERNEL_OK")
</pallas_src>

<mosaic_0001>
module attributes {stable_mosaic.version = 11 : i64} {
  func.func @_fusion_kernel(%arg0: memref<16x128xf32, #tpu.memory_space<vmem>>, %arg1: memref<128x128xf32, #tpu.memory_space<vmem>>, %arg2: memref<1x128xf32, #tpu.memory_space<vmem>>, %arg3: memref<16x128xf32, #tpu.memory_space<vmem>>) attributes {dimension_semantics = [], scalar_prefetch = 0 : i64, scratch_operands = 0 : i64, tpu.core_type = #tpu.core_type<tc>} {
    %c0 = arith.constant 0 : index
    %c0_0 = arith.constant 0 : index
    %0 = vector.load %arg0[%c0, %c0_0] : memref<16x128xf32, #tpu.memory_space<vmem>>, vector<16x128xf32>
    %c0_1 = arith.constant 0 : index
    %c0_2 = arith.constant 0 : index
    %1 = vector.load %arg1[%c0_1, %c0_2] : memref<128x128xf32, #tpu.memory_space<vmem>>, vector<128x128xf32>
    %cst = arith.constant dense<0.000000e+00> : vector<16x128xf32>
    %2 = tpu.matmul %0, %1, %cst {dimension_numbers = #tpu.dot_dimension_numbers<[1], [0], [0], [1], [0, 0, 1, 1], [], []>} : vector<16x128xf32>, vector<128x128xf32>, vector<16x128xf32> -> vector<16x128xf32>
    %c0_3 = arith.constant 0 : index
    %c0_4 = arith.constant 0 : index
    %3 = vector.load %arg2[%c0_3, %c0_4] : memref<1x128xf32, #tpu.memory_space<vmem>>, vector<1x128xf32>
    %4 = vector.broadcast %3 : vector<1x128xf32> to vector<16x128xf32>
    %5 = arith.addf %2, %4 : vector<16x128xf32>
    %c0_5 = arith.constant 0 : index
    %c0_6 = arith.constant 0 : index
    %6 = vector.load %arg3[%c0_5, %c0_6] : memref<16x128xf32, #tpu.memory_space<vmem>>, vector<16x128xf32>
    tpu.vector_store %arg3[%c0_5, %c0_6], %5 {strides = array<i32>} : memref<16x128xf32, #tpu.memory_space<vmem>>, vector<16x128xf32>,
    return
  }
}

module attributes {stable_mosaic.version = 11 : i64} {
  func.func @_mlp_kernel(%arg0: memref<1xi32, #tpu.memory_space<smem>>, %arg1: memref<8x256xf32, #tpu.memory_space<vmem>>, %arg2: memref<256x128xf32, #tpu.memory_space<vmem>>, %arg3: memref<1x128xf32, #tpu.memory_space<vmem>>, %arg4: memref<1x128xf32, #tpu.memory_space<vmem>>, %arg5: memref<128x128xf32, #tpu.memory_space<vmem>>, %arg6: memref<1x128xf32, #tpu.memory_space<vmem>>, %arg7: memref<1x128xf32, #tpu.memory_space<vmem>>, %arg8: memref<128x128xf32, #tpu.memory_space<vmem>>, %arg9: memref<1x128xf32, #tpu.memory_space<vmem>>, %arg10: memref<8x128xf32, #tpu.memory_space<vmem>>) attributes {dimension_semantics = [], scalar_prefetch = 0 : i64, scratch_operands = 0 : i64, tpu.core_type = #tpu.core_type<tc>} {
    %c0 = arith.constant 0 : index
    %0 = memref.load %arg0[%c0] : memref<1xi32, #tpu.memory_space<smem>>
    %1 = arith.sitofp %0 : i32 to f32
    %cst = arith.constant 1.000000e+00 : f32
    %2 = arith.divf %cst, %1 : f32
    %3 = tpu.iota {dimensions = array<i32: 0>} : vector<8x1xi32>
    %4 = vector.broadcast %0 : i32 to vector<8x1xi32>
    %5 = arith.cmpi slt, %3, %4 : vector<8x1xi32>
    %6 = arith.extui %5 : vector<8x1xi1> to vector<8x1xi32>
    %7 = arith.sitofp %6 : vector<8x1xi32> to vector<8x1xf32>
    %c0_0 = arith.constant 0 : index
    %c0_1 = arith.constant 0 : index
    %8 = vector.load %arg1[%c0_0, %c0_1] : memref<8x256xf32, #tpu.memory_space<vmem>>, vector<8x256xf32>
    %c0_2 = arith.constant 0 : index
    %c0_3 = arith.constant 0 : index
    %9 = vector.load %arg2[%c0_2, %c0_3] : memref<256x128xf32, #tpu.memory_space<vmem>>, vector<256x128xf32>
    %cst_4 = arith.constant dense<0.000000e+00> : vector<8x128xf32>
    %10 = tpu.matmul %8, %9, %cst_4 {dimension_numbers = #tpu.dot_dimension_numbers<[1], [0], [0], [1], [0, 0, 1, 1], [], []>} : vector<8x256xf32>, vector<256x128xf32>, vector<8x128xf32> -> vector<8x128xf32>
    %c0_5 = arith.constant 0 : index
    %c0_6 = arith.constant 0 : index
    %11 = vector.load %arg3[%c0_5, %c0_6] : memref<1x128xf32, #tpu.memory_space<vmem>>, vector<1x128xf32>
    %c0_7 = arith.constant 0 : index
    %c0_8 = arith.constant 0 : index
    %12 = vector.load %arg4[%c0_7, %c0_8] : memref<1x128xf32, #tpu.memory_space<vmem>>, vector<1x128xf32>
    %13 = vector.broadcast %7 : vector<8x1xf32> to vector<8x128xf32>
    %14 = arith.mulf %10, %13 : vector<8x128xf32>
    %cst_9 = arith.constant dense<0.000000e+00> : vector<128xf32>
    %15 = vector.multi_reduction <add>, %14, %cst_9 [0] : vector<8x128xf32> to vector<128xf32>
    %16 = vector.shape_cast %15 : vector<128xf32> to vector<1x128xf32>
    %17 = vector.broadcast %2 : f32 to vector<1x128xf32>
    %18 = arith.mulf %16, %17 : vector<1x128xf32>
    %19 = vector.broadcast %18 : vector<1x128xf32> to vector<8x128xf32>
    %20 = arith.subf %10, %19 : vector<8x128xf32>
    %21 = arith.mulf %20, %20 : vector<8x128xf32>
    %22 = vector.broadcast %7 : vector<8x1xf32> to vector<8x128xf32>
    %23 = arith.mulf %21, %22 : vector<8x128xf32>
    %cst_10 = arith.constant dense<0.000000e+00> : vector<128xf32>
    %24 = vector.multi_reduction <add>, %23, %cst_10 [0] : vector<8x128xf32> to vector<128xf32>
    %25 = vector.shape_cast %24 : vector<128xf32> to vector<1x128xf32>
    %26 = vector.broadcast %2 : f32 to vector<1x128xf32>
    %27 = arith.mulf %25, %26 : vector<1x128xf32>
    %cst_11 = arith.constant 9.99999974E-6 : f32
    %28 = vector.broadcast %cst_11 : f32 to vector<1x128xf32>
    %29 = arith.addf %27, %28 : vector<1x128xf32>
    %30 = math.rsqrt %29 : vector<1x128xf32>
    %31 = arith.mulf %11, %30 : vector<1x128xf32>
    %32 = arith.mulf %18, %31 : vector<1x128xf32>
    %33 = arith.subf %12, %32 : vector<1x128xf32>
    %34 = vector.broadcast %31 : vector<1x128xf32> to vector<8x128xf32>
    %35 = arith.mulf %10, %34 : vector<8x128xf32>
    %36 = vector.broadcast %33 : vector<1x128xf32> to vector<8x128xf32>
    %37 = arith.addf %35, %36 : vector<8x128xf32>
    %cst_12 = arith.constant 0.000000e+00 : f32
    %38 = vector.broadcast %cst_12 : f32 to vector<8x128xf32>
    %39 = arith.maximumf %37, %38 : vector<8x128xf32>
    %c0_13 = arith.constant 0 : index
    %c0_14 = arith.constant 0 : index
    %40 = vector.load %arg5[%c0_13, %c0_14] : memref<128x128xf32, #tpu.memory_space<vmem>>, vector<128x128xf32>
    %cst_15 = arith.constant dense<0.000000e+00> : vector<8x128xf32>
    %41 = tpu.matmul %39, %40, %cst_15 {dimension_numbers = #tpu.dot_dimension_numbers<[1], [0], [0], [1], [0, 0, 1, 1], [], []>} : vector<8x128xf32>, vector<128x128xf32>, vector<8x128xf32> -> vector<8x128xf32>
    %c0_16 = arith.constant 0 : index
    %c0_17 = arith.constant 0 : index
    %42 = vector.load %arg6[%c0_16, %c0_17] : memref<1x128xf32, #tpu.memory_space<vmem>>, vector<1x128xf32>
    %c0_18 = arith.constant 0 : index
    %c0_19 = arith.constant 0 : index
    %43 = vector.load %arg7[%c0_18, %c0_19] : memref<1x128xf32, #tpu.memory_space<vmem>>, vector<1x128xf32>
    %44 = vector.broadcast %7 : vector<8x1xf32> to vector<8x128xf32>
    %45 = arith.mulf %41, %44 : vector<8x128xf32>
    %cst_20 = arith.constant dense<0.000000e+00> : vector<128xf32>
    %46 = vector.multi_reduction <add>, %45, %cst_20 [0] : vector<8x128xf32> to vector<128xf32>
    %47 = vector.shape_cast %46 : vector<128xf32> to vector<1x128xf32>
    %48 = vector.broadcast %2 : f32 to vector<1x128xf32>
    %49 = arith.mulf %47, %48 : vector<1x128xf32>
    %50 = vector.broadcast %49 : vector<1x128xf32> to vector<8x128xf32>
    %51 = arith.subf %41, %50 : vector<8x128xf32>
    %52 = arith.mulf %51, %51 : vector<8x128xf32>
    %53 = vector.broadcast %7 : vector<8x1xf32> to vector<8x128xf32>
    %54 = arith.mulf %52, %53 : vector<8x128xf32>
    %cst_21 = arith.constant dense<0.000000e+00> : vector<128xf32>
    %55 = vector.multi_reduction <add>, %54, %cst_21 [0] : vector<8x128xf32> to vector<128xf32>
    %56 = vector.shape_cast %55 : vector<128xf32> to vector<1x128xf32>
    %57 = vector.broadcast %2 : f32 to vector<1x128xf32>
    %58 = arith.mulf %56, %57 : vector<1x128xf32>
    %cst_22 = arith.constant 9.99999974E-6 : f32
    %59 = vector.broadcast %cst_22 : f32 to vector<1x128xf32>
    %60 = arith.addf %58, %59 : vector<1x128xf32>
    %61 = math.rsqrt %60 : vector<1x128xf32>
    %62 = arith.mulf %42, %61 : vector<1x128xf32>
    %63 = arith.mulf %49, %62 : vector<1x128xf32>
    %64 = arith.subf %43, %63 : vector<1x128xf32>
    %65 = vector.broadcast %62 : vector<1x128xf32> to vector<8x128xf32>
    %66 = arith.mulf %41, %65 : vector<8x128xf32>
    %67 = vector.broadcast %64 : vector<1x128xf32> to vector<8x128xf32>
    %68 = arith.addf %66, %67 : vector<8x128xf32>
    %cst_23 = arith.constant 0.000000e+00 : f32
    %69 = vector.broadcast %cst_23 : f32 to vector<8x128xf32>
    %70 = arith.maximumf %68, %69 : vector<8x128xf32>
    %c0_24 = arith.constant 0 : index
    %c0_25 = arith.constant 0 : index
    %71 = vector.load %arg8[%c0_24, %c0_25] : memref<128x128xf32, #tpu.memory_space<vmem>>, vector<128x128xf32>
    %cst_26 = arith.constant dense<0.000000e+00> : vector<8x128xf32>
    %72 = tpu.matmul %70, %71, %cst_26 {dimension_numbers = #tpu.dot_dimension_numbers<[1], [0], [0], [1], [0, 0, 1, 1], [], []>} : vector<8x128xf32>, vector<128x128xf32>, vector<8x128xf32> -> vector<8x128xf32>
    %c0_27 = arith.constant 0 : index
    %c0_28 = arith.constant 0 : index
    %73 = vector.load %arg9[%c0_27, %c0_28] : memref<1x128xf32, #tpu.memory_space<vmem>>, vector<1x128xf32>
    %74 = vector.broadcast %73 : vector<1x128xf32> to vector<8x128xf32>
    %75 = arith.addf %72, %74 : vector<8x128xf32>
    %76 = arith.negf %75 : vector<8x128xf32>
    %77 = math.exp %76 : vector<8x128xf32>
    %cst_29 = arith.constant 1.000000e+00 : f32
    %78 = vector.broadcast %cst_29 : f32 to vector<8x128xf32>
    %79 = arith.addf %78, %77 : vector<8x128xf32>
    %80 = arith.divf %78, %79 : vector<8x128xf32>
    %c0_30 = arith.constant 0 : index
    %c0_31 = arith.constant 0 : index
    %81 = vector.load %arg10[%c0_30, %c0_31] : memref<8x128xf32, #tpu.memory_space<vmem>>, vector<8x128xf32>
    tpu.vector_store %arg10[%c0_30, %c0_31], %80 {strides = array<i32>} : memref<8x128xf32, #tpu.memory_space<vmem>>, vector<8x128xf32>,
    return
  }
}

</mosaic_0001>

<bundles_post_ra>
// kernel: _lambda_.2
= control target key start
LH: loop header
LB: loop body
LE: loop exit
PB: predicated region body
PF: predicated region fallthrough
CT: control target
= control target key end

     0   :  { %8 = vsyncpa [#allocation3], 0  ;;  %s128_s15 = smov [#allocation2]   ;;  %s129_s17 = smov 128   ;;  %s169_s0 = inlined_call_operand.vmem [shape: f32[16,128], index: 0, kind: input, shape index: {}]   ;;  %s170_s1 = inlined_call_operand.hbm [shape: f32[128,128], index: 1, kind: input, shape index: {}]   ;;  %s171_s2 = inlined_call_operand.vmem [shape: f32[1,128], index: 2, kind: input, shape index: {}]   ;;  %s172_s3 = inlined_call_operand.vmem [shape: f32[16,128], index: 3, kind: output, shape index: {}]  }
   0x1   :  { %s15_s14 = sshll.u32 %s170_s1, 4  ;;  %s17_s16 = sshll.u32 %s128_s15, 4  ;;  %s16_s14 = int_to_ptr.hbm [resolvable:$true] %s15_s14  ;;  %s18_s16 = int_to_ptr.vmem [resolvable:$true] %s17_s16 }
   0x2   :  { %s130_s18 = smov 8  }
   0x3   :  { %23 = dma.hbm_to_vmem [thread:$0]  %s16_s14, 2048, %s18_s16, [#allocation3], %s129_s17, %s129_s17, %s130_s18  }
   0x4   :  { %126 = dma.done.wait [#allocation3], 2048  }
   0x5   :  { %127 = vsyncadd [#allocation3], 4294965248  ;;  %v47_v0 = vld [vmem:[#allocation2 + $0x78] sm:$0xff]  ;;  %v46_v1 = vld [vmem:[#allocation2 + $0x70] sm:$0xff] }
   0x6   :  { %52 = vmatpush.msra.mxu0 %v47_v0  ;;  %82 = vmatpush.msra.mxu1 %v47_v0  ;;  %v45_v2 = vld [vmem:[#allocation2 + $0x68] sm:$0xff]  ;;  %v44_v3 = vld [vmem:[#allocation2 + $0x60] sm:$0xff]  ;;  %v43_v4 = vld [vmem:[#allocation2 + $0x58] sm:$0xff] }
   0x7   :  { %v42_v5 = vld [vmem:[#allocation2 + $0x50] sm:$0xff]  ;;  %v41_v6 = vld [vmem:[#allocation2 + $0x48] sm:$0xff]  ;;  %v40_v7 = vld [vmem:[#allocation2 + $0x40] sm:$0xff] }
   0x8   :  { %53 = vmatpush.msra.mxu0 %v46_v1  ;;  %83 = vmatpush.msra.mxu1 %v46_v1  ;;  %v39_v8 = vld [vmem:[#allocation2 + $0x38] sm:$0xff]  ;;  %v38_v9 = vld [vmem:[#allocation2 + $0x30] sm:$0xff]  ;;  %v37_v10 = vld [vmem:[#allocation2 + $0x28] sm:$0xff] }
   0x9   :  { %v36_v11 = vld [vmem:[#allocation2 + $0x20] sm:$0xff]  ;;  %v35_v12 = vld [vmem:[#allocation2 + $0x18] sm:$0xff]  ;;  %v34_v13 = vld [vmem:[#allocation2 + $0x10] sm:$0xff] }
   0xa   :  { %54 = vmatpush.msra.mxu0 %v45_v2  ;;  %84 = vmatpush.msra.mxu1 %v45_v2  ;;  %v33_v14 = vld [vmem:[#allocation2 + $0x8] sm:$0xff]  ;;  %v32_v15 = vld [vmem:[#allocation2] sm:$0xff] }
   0xb   :  { %v30_v16 = vld [vmem:[%s169_s0] sm:$0xff]  ;;  %v31_v17 = vld [vmem:[%s169_s0 + $0x8] sm:$0xff] }
   0xc   :  { %55 = vmatpush.msra.mxu0 %v44_v3  ;;  %85 = vmatpush.msra.mxu1 %v44_v3  ;;  %v101_v18 = vld [vmem:[%s171_s2] ss:$0 sm:$0xff] }
   0xe   :  { %56 = vmatpush.msra.mxu0 %v43_v4  ;;  %86 = vmatpush.msra.mxu1 %v43_v4 }
  0x10   :  { %57 = vmatpush.msra.mxu0 %v42_v5  ;;  %87 = vmatpush.msra.mxu1 %v42_v5 }
  0x12   :  { %58 = vmatpush.msra.mxu0 %v41_v6  ;;  %88 = vmatpush.msra.mxu1 %v41_v6 }
  0x14   :  { %59 = vmatpush.msra.mxu0 %v40_v7  ;;  %89 = vmatpush.msra.mxu1 %v40_v7 }
  0x16   :  { %60 = vmatpush.msra.mxu0 %v39_v8  ;;  %90 = vmatpush.msra.mxu1 %v39_v8 }
  0x18   :  { %61 = vmatpush.msra.mxu0 %v38_v9  ;;  %91 = vmatpush.msra.mxu1 %v38_v9 }
  0x1a   :  { %62 = vmatpush.msra.mxu0 %v37_v10  ;;  %92 = vmatpush.msra.mxu1 %v37_v10 }
  0x1c   :  { %63 = vmatpush.msra.mxu0 %v36_v11  ;;  %93 = vmatpush.msra.mxu1 %v36_v11 }
  0x1e   :  { %64 = vmatpush.msra.mxu0 %v35_v12  ;;  %94 = vmatpush.msra.mxu1 %v35_v12 }
  0x20   :  { %65 = vmatpush.msra.mxu0 %v34_v13  ;;  %95 = vmatpush.msra.mxu1 %v34_v13 }
  0x22   :  { %66 = vmatpush.msra.mxu0 %v33_v14  ;;  %96 = vmatpush.msra.mxu1 %v33_v14 }
  0x24   :  { %67 = vmatpush.msra.mxu0 %v32_v15  ;;  %97 = vmatpush.msra.mxu1 %v32_v15 }
  0x25   :  { %68 = vmatmul.f32.vlgmr.msra.gmra.mxu0 %v30_v16  ;;  %71 = vmatmul.f32.vlgmr.msra.gmra.mxu1 %v31_v17 }
  0xa2   :  { %v69_v19 = vpop.f32.mrf.mxu0  ;;  %v72_v20 = vpop.f32.mrf.mxu1 }
  0xa3   :  { %v70_v21 = vadd.f32 %v101_v18, %v69_v19  ;;  %v73_v22 = vadd.f32 %v101_v18, %v72_v20 }
  0xa5   :  { %75 = vst [vmem:[%s172_s3] sm:$0xff] %v70_v21 }
  0xa6   :  { %76 = vst [vmem:[%s172_s3 + $0x8] sm:$0xff] %v73_v22 }
  0xa7   :  { %81 = vsyncpa [#allocation3], 1 }

// kernel: _lambda_.3
= control target key start
LH: loop header
LB: loop body
LE: loop exit
PB: predicated region body
PF: predicated region fallthrough
CT: control target
= control target key end

     0   :  { %16 = vsyncpa [#allocation4], 0  ;;  %s593_s0 = inlined_call_operand.<no memory space> [shape: s32[1], index: 0, kind: input, shape index: {}]   ;;  %s594_s1 = inlined_call_operand.vmem [shape: f32[8,256], index: 1, kind: input, shape index: {}]   ;;  %s595_s2 = inlined_call_operand.hbm [shape: f32[256,128], index: 2, kind: input, shape index: {}]   ;;  %s596_s3 = inlined_call_operand.vmem [shape: f32[1,128], index: 3, kind: input, shape index: {}]   ;;  %s597_s4 = inlined_call_operand.vmem [shape: f32[1,128], index: 4, kind: input, shape index: {}, may-alias: {4,7}]   ;;  %s598_s5 = inlined_call_operand.vmem [shape: f32[128,128], index: 5, kind: input, shape index: {}]   ;;  %s599_s6 = inlined_call_operand.vmem [shape: f32[1,128], index: 6, kind: input, shape index: {}]   ;;  %s600_s7 = inlined_call_operand.vmem [shape: f32[1,128], index: 7, kind: input, shape index: {}, may-alias: {4,7}]   ;;  %s601_s8 = inlined_call_operand.hbm [shape: f32[128,128], index: 8, kind: input, shape index: {}]   ;;  %s602_s9 = inlined_call_operand.vmem [shape: f32[1,128], index: 9, kind: input, shape index: {}]   ;;  %s603_s10 = inlined_call_operand.vmem [shape: f32[8,128], index: 10, kind: output, shape index: {}]  }
   0x1   :  { %s26_s15 = sshll.u32 %s595_s2, 4  ;;  %s27_s15 = int_to_ptr.hbm [resolvable:$true] %s26_s15 }
   0x2   :  { %17 = vsyncpa [#allocation6], 0  ;;  %s427_s16 = smov [#allocation3]   ;;  %s49_s20 = sshll.u32 %s601_s8, 4  ;;  %s50_s20 = int_to_ptr.hbm [resolvable:$true] %s49_s20 }
   0x3   :  { %s28_s17 = sshll.u32 %s427_s16, 4  ;;  %s428_s21 = smov 128   ;;  %s29_s17 = int_to_ptr.vmem [resolvable:$true] %s28_s17 }
   0x4   :  { %s429_s22 = smov 8   ;;  %s430_s23 = smov [#allocation5]  }
   0x5   :  { %34 = dma.hbm_to_vmem [thread:$0]  %s27_s15, 4096, %s29_s17, [#allocation4], %s428_s21, %s428_s21, %s429_s22  }
   0x6   :  { %s51_s24 = sshll.u32 %s430_s23, 4  ;;  %s52_s24 = int_to_ptr.vmem [resolvable:$true] %s51_s24 }
   0x7   :  { %57 = dma.hbm_to_vmem [thread:$0]  %s50_s20, 2048, %s52_s24, [#allocation6], %s428_s21, %s428_s21, %s429_s22  }
   0x8   :  { %423 = dma.done.wait [#allocation4], 4096  }
   0x9   :  { %424 = vsyncadd [#allocation4], 4294963200 }
   0xa   :  { %425 = dma.done.wait [#allocation6], 2048  }
   0xb   :  { %426 = vsyncadd [#allocation6], 4294965248  ;;  %s69_s26 = scvt.s32.f32 %s593_s0  ;;  %v109_v0 = vld [vmem:[#allocation3 + $0x78] sm:$0xff]  ;;  %v108_v2 = vld [vmem:[#allocation3 + $0x70] sm:$0xff]  ;;  %v86_v45 = vlaneseq  ;;  %v88_v47 = vstv %s593_s0  ;;  %v431_v49 = vmov 0.0  }
   0xc   :  { %v125_v1 = vld [vmem:[#allocation3 + $0xf8] sm:$0xff]  ;;  %126 = vmatpush.msra.mxu0 %v109_v0  ;;  %v124_v4 = vld [vmem:[#allocation3 + $0xf0] sm:$0xff]  ;;  %v107_v5 = vld [vmem:[#allocation3 + $0x68] sm:$0xff] }
   0xd   :  { %v70_v3 = vstv %s69_s26  ;;  %146 = vmatpush.msra.mxu1 %v125_v1  ;;  %v123_v6 = vld [vmem:[#allocation3 + $0xe8] sm:$0xff]  ;;  %v106_v7 = vld [vmem:[#allocation3 + $0x60] sm:$0xff]  ;;  %v105_v9 = vld [vmem:[#allocation3 + $0x58] sm:$0xff]  ;;  %v87_v46 = vshrl.u32 %v86_v45, 7 }
   0xe   :  { %365 = vrcp.f32 %v70_v3  ;;  %127 = vmatpush.msra.mxu0 %v108_v2  ;;  %v122_v8 = vld [vmem:[#allocation3 + $0xe0] sm:$0xff]  ;;  %v121_v10 = vld [vmem:[#allocation3 + $0xd8] sm:$0xff]  ;;  %v104_v12 = vld [vmem:[#allocation3 + $0x50] sm:$0xff]  ;;  %v82_v15 = vand.u32 2147483648, %v70_v3  ;;  %vm76_vm0 = vweird.f32 %v70_v3  ;;  %v80_v19 = vand.u32 2147483647, %v70_v3 }
   0xf   :  { %147 = vmatpush.msra.mxu1 %v124_v4  ;;  %v120_v13 = vld [vmem:[#allocation3 + $0xd0] sm:$0xff]  ;;  %v103_v16 = vld [vmem:[#allocation3 + $0x48] sm:$0xff]  ;;  %v102_v20 = vld [vmem:[#allocation3 + $0x40] sm:$0xff]  ;;  %vm89_vm4 = vcmp.lt.s32.totalorder %v87_v46, %v88_v47 }
  0x10   :  { %128 = vmatpush.msra.mxu0 %v107_v5  ;;  %v119_v17 = vld [vmem:[#allocation3 + $0xc8] sm:$0xff]  ;;  %v118_v21 = vld [vmem:[#allocation3 + $0xc0] sm:$0xff]  ;;  %v83_v23 = vor.u32 1.1754944e-38, %v82_v15  ;;  %v101_v24 = vld [vmem:[#allocation3 + $0x38] sm:$0xff]  ;;  %vm81_vm3 = vcmp.eq.f32.partialorder %v80_v19, 8.507059e+37  ;;  %v505_v50 = vsel %vm89_vm4, 1.0, %v431_v49 }
  0x11   :  { %148 = vmatpush.msra.mxu1 %v123_v6  ;;  %v117_v25 = vld [vmem:[#allocation3 + $0xb8] sm:$0xff]  ;;  %v100_v27 = vld [vmem:[#allocation3 + $0x30] sm:$0xff]  ;;  %v99_v31 = vld [vmem:[#allocation3 + $0x28] sm:$0xff] }
  0x12   :  { %129 = vmatpush.msra.mxu0 %v106_v7  ;;  %v116_v28 = vld [vmem:[#allocation3 + $0xb0] sm:$0xff]  ;;  %v115_v32 = vld [vmem:[#allocation3 + $0xa8] sm:$0xff]  ;;  %v98_v33 = vld [vmem:[#allocation3 + $0x20] sm:$0xff] }
  0x13   :  { %149 = vmatpush.msra.mxu1 %v122_v8  ;;  %v114_v34 = vld [vmem:[#allocation3 + $0xa0] sm:$0xff]  ;;  %v97_v35 = vld [vmem:[#allocation3 + $0x18] sm:$0xff]  ;;  %v96_v37 = vld [vmem:[#allocation3 + $0x10] sm:$0xff] }
  0x14   :  { %v366_v11 = vpop.eup %365  ;;  %130 = vmatpush.msra.mxu0 %v105_v9  ;;  %v113_v36 = vld [vmem:[#allocation3 + $0x98] sm:$0xff]  ;;  %v112_v38 = vld [vmem:[#allocation3 + $0x90] sm:$0xff]  ;;  %v95_v39 = vld [vmem:[#allocation3 + $0x8] sm:$0xff] }
  0x15   :  { %v72_v14 = vmul.f32 %v366_v11, %v70_v3  ;;  %150 = vmatpush.msra.mxu1 %v121_v10  ;;  %vm77_vm1 = vweird.f32 %v366_v11  ;;  %v111_v40 = vld [vmem:[#allocation3 + $0x88] sm:$0xff]  ;;  %v94_v41 = vld [vmem:[#allocation3] sm:$0xff]  ;;  %v225_v56 = vld [vmem:[%s598_s5 + $0x78] sm:$0xff] }
  0x16   :  { %131 = vmatpush.msra.mxu0 %v104_v12  ;;  %vm78_vm2 = vmor %vm76_vm0, %vm77_vm1  ;;  %v110_v42 = vld [vmem:[#allocation3 + $0x80] sm:$0xff]  ;;  %v93_v44 = vld [vmem:[%s594_s1 + $0x8] sm:$0xff]  ;;  %226 = vmatpush.msra.mxu2 %v225_v56 }
  0x17   :  { %v73_v18 = vsub.f32 1.0, %v72_v14  ;;  %151 = vmatpush.msra.mxu1 %v120_v13  ;;  %v92_v43 = vld [vmem:[%s594_s1] sm:$0xff]  ;;  %v224_v58 = vld [vmem:[%s598_s5 + $0x70] sm:$0xff]  ;;  %v223_v60 = vld [vmem:[%s598_s5 + $0x68] sm:$0xff] }
  0x18   :  { %132 = vmatpush.msra.mxu0 %v103_v16  ;;  %227 = vmatpush.msra.mxu2 %v224_v58  ;;  %v222_v62 = vld [vmem:[%s598_s5 + $0x60] sm:$0xff]  ;;  %v221_v1 = vld [vmem:[%s598_s5 + $0x58] sm:$0xff]  ;;  %v220_v3 = vld [vmem:[%s598_s5 + $0x50] sm:$0xff] }
  0x19   :  { %v74_v22 = vmul.f32 %v366_v11, %v73_v18  ;;  %152 = vmatpush.msra.mxu1 %v119_v17  ;;  %v219_v5 = vld [vmem:[%s598_s5 + $0x48] sm:$0xff]  ;;  %v218_v7 = vld [vmem:[%s598_s5 + $0x40] sm:$0xff]  ;;  %v217_v9 = vld [vmem:[%s598_s5 + $0x38] sm:$0xff] }
  0x1a   :  { %133 = vmatpush.msra.mxu0 %v102_v20  ;;  %228 = vmatpush.msra.mxu2 %v223_v60  ;;  %v215_v13 = vld [vmem:[%s598_s5 + $0x28] sm:$0xff]  ;;  %v214_v15 = vld [vmem:[%s598_s5 + $0x20] sm:$0xff]  ;;  %v213_v16 = vld [vmem:[%s598_s5 + $0x18] sm:$0xff] }
  0x1b   :  { %v75_v26 = vadd.f32 %v366_v11, %v74_v22  ;;  %153 = vmatpush.msra.mxu1 %v118_v21  ;;  %v212_v18 = vld [vmem:[%s598_s5 + $0x10] sm:$0xff]  ;;  %v211_v20 = vld [vmem:[%s598_s5 + $0x8] sm:$0xff]  ;;  %v210_v22 = vld [vmem:[%s598_s5] sm:$0xff] }
  0x1c   :  { %134 = vmatpush.msra.mxu0 %v101_v24  ;;  %229 = vmatpush.msra.mxu2 %v222_v62  ;;  %v304_v46 = vld [vmem:[#allocation5 + $0x78] sm:$0xff] }
  0x1d   :  { %v79_v29 = vsel %vm78_vm2, %v366_v11, %v75_v26  ;;  %154 = vmatpush.msra.mxu1 %v117_v25  ;;  %v216_v11 = vld [vmem:[%s598_s5 + $0x30] sm:$0xff]  ;;  %309 = vmatpush.msra.mxu3 %v304_v46 }
  0x1e   :  { %v84_v30 = vsel %vm81_vm3, %v83_v23, %v79_v29  ;;  %135 = vmatpush.msra.mxu0 %v100_v27  ;;  %230 = vmatpush.msra.mxu2 %v221_v1 }
  0x1f   :  { %357 = vpush %v84_v30  ;;  %155 = vmatpush.msra.mxu1 %v116_v28  ;;  %v166_v30 = vld [vmem:[%s596_s3] sm:$0x1] }
  0x20   :  { %136 = vmatpush.msra.mxu0 %v99_v31  ;;  %231 = vmatpush.msra.mxu2 %v220_v3 }
  0x21   :  { %156 = vmatpush.msra.mxu1 %v115_v32 }
  0x22   :  { %137 = vmatpush.msra.mxu0 %v98_v33  ;;  %232 = vmatpush.msra.mxu2 %v219_v5 }
  0x23   :  { %157 = vmatpush.msra.mxu1 %v114_v34  ;;  %v167_v34 = vld [vmem:[%s597_s4] sm:$0x1] }
  0x24   :  { %138 = vmatpush.msra.mxu0 %v97_v35  ;;  %233 = vmatpush.msra.mxu2 %v218_v7 }
  0x25   :  { %158 = vmatpush.msra.mxu1 %v113_v36 }
  0x26   :  { %139 = vmatpush.msra.mxu0 %v96_v37  ;;  %234 = vmatpush.msra.mxu2 %v217_v9  ;;  %v291_v9 = vld [vmem:[#allocation5 + $0x10] sm:$0xff] }
  0x27   :  { %159 = vmatpush.msra.mxu1 %v112_v38 }
  0x28   :  { %140 = vmatpush.msra.mxu0 %v95_v39  ;;  %235 = vmatpush.msra.mxu2 %v216_v11  ;;  %v290_v11 = vld [vmem:[#allocation5 + $0x8] sm:$0xff] }
  0x29   :  { %160 = vmatpush.msra.mxu1 %v111_v40 }
  0x2a   :  { %141 = vmatpush.msra.mxu0 %v94_v41  ;;  %236 = vmatpush.msra.mxu2 %v215_v13 }
  0x2b   :  { %161 = vmatpush.msra.mxu1 %v110_v42  ;;  %142 = vmatmul.f32.vlgmr.msra.gmra.mxu0 %v92_v43 }
  0x2c   :  { %162 = vmatmul.f32.vlgmr.msra.gmra.mxu1 %v93_v44  ;;  %237 = vmatpush.msra.mxu2 %v214_v15 }
  0x2e   :  { %238 = vmatpush.msra.mxu2 %v213_v16 }
  0x30   :  { %239 = vmatpush.msra.mxu2 %v212_v18 }
  0x32   :  { %240 = vmatpush.msra.mxu2 %v211_v20  ;;  %v246_v20 = vld [vmem:[%s599_s6] sm:$0x1] }
  0x34   :  { %241 = vmatpush.msra.mxu2 %v210_v22 }
  0x50   :  { %s358_s14 = spop %357 }
  0x51   :  { %v523_v63 = vstv %s358_s14 }
  0xa8   :  { %v143_v48 = vpop.f32.mrf.mxu0 }
  0xa9   :  { %v163_v51 = vpop.f32.mrf.mxu1 }
  0xaa   :  { %v507_v52 = vadd.f32 %v163_v51, %v143_v48  ;;  %v303_v48 = vld [vmem:[#allocation5 + $0x70] sm:$0xff]  ;;  %v302_v51 = vld [vmem:[#allocation5 + $0x68] sm:$0xff] }
  0xab   :  { %310 = vmatpush.msra.mxu3 %v303_v48 }
  0xac   :  { %v168_v53 = vmul.f32 %v505_v50, %v507_v52 }
  0xad   :  { %311 = vmatpush.msra.mxu3 %v302_v51 }
  0xae   :  { %v169_v54 = vrot.slane %v168_v53, 4 }
  0xb0   :  { %v170_v55 = vadd.f32 %v169_v54, %v168_v53  ;;  %v301_v53 = vld [vmem:[#allocation5 + $0x60] sm:$0xff] }
  0xb1   :  { %312 = vmatpush.msra.mxu3 %v301_v53 }
  0xb2   :  { %v171_v57 = vrot.slane %v170_v55, 2 }
  0xb4   :  { %v172_v59 = vadd.f32 %v171_v57, %v170_v55  ;;  %v300_v55 = vld [vmem:[#allocation5 + $0x58] sm:$0xff]  ;;  %v299_v57 = vld [vmem:[#allocation5 + $0x50] sm:$0xff] }
  0xb5   :  { %313 = vmatpush.msra.mxu3 %v300_v55 }
  0xb6   :  { %v173_v61 = vrot.slane %v172_v59, 1 }
  0xb7   :  { %314 = vmatpush.msra.mxu3 %v299_v57 }
  0xb8   :  { %v174_v0 = vadd.f32 %v173_v61, %v172_v59  ;;  %v298_v59 = vld [vmem:[#allocation5 + $0x48] sm:$0xff]  ;;  %v297_v61 = vld [vmem:[#allocation5 + $0x40] sm:$0xff] }
  0xb9   :  { %315 = vmatpush.msra.mxu3 %v298_v59 }
  0xba   :  { %v176_v2 = vmul.f32 %v523_v63, %v174_v0  ;;  %v296_v0 = vld [vmem:[#allocation5 + $0x38] sm:$0xff] }
  0xbb   :  { %316 = vmatpush.msra.mxu3 %v297_v61 }
  0xbc   :  { %v177_v4 = vsub.f32 %v507_v52, %v176_v2 }
  0xbd   :  { %317 = vmatpush.msra.mxu3 %v296_v0 }
  0xbe   :  { %v178_v6 = vmul.f32 %v177_v4, %v177_v4  ;;  %v294_v4 = vld [vmem:[#allocation5 + $0x28] sm:$0xff] }
  0xc0   :  { %v179_v8 = vmul.f32 %v505_v50, %v178_v6  ;;  %v293_v6 = vld [vmem:[#allocation5 + $0x20] sm:$0xff] }
  0xc2   :  { %v180_v10 = vrot.slane %v179_v8, 4 }
  0xc4   :  { %v181_v12 = vadd.f32 %v180_v10, %v179_v8  ;;  %v292_v8 = vld [vmem:[#allocation5 + $0x18] sm:$0xff] }
  0xc6   :  { %v182_v14 = vrot.slane %v181_v12, 2 }
  0xc8   :  { %v183_v17 = vadd.f32 %v182_v14, %v181_v12 }
  0xca   :  { %v184_v19 = vrot.slane %v183_v17, 1 }
  0xcc   :  { %v185_v21 = vadd.f32 %v184_v19, %v183_v17 }
  0xce   :  { %v186_v23 = vmul.f32 %v185_v21, %v523_v63 }
  0xd0   :  { %v187_v24 = vadd.f32 1e-05, %v186_v23 }
  0xd2   :  { %367 = vrsqrt.f32 %v187_v24  ;;  %vm194_vm6 = vweird.f32 %v187_v24 }
  0xd8   :  { %v368_v25 = vpop.eup %367 }
  0xd9   :  { %v189_v26 = vmul.f32 %v368_v25, %v187_v24  ;;  %vm195_vm5 = vweird.f32 %v368_v25 }
  0xda   :  { %vm196_vm7 = vmor %vm194_vm6, %vm195_vm5 }
  0xdb   :  { %v190_v27 = vmul.f32 %v368_v25, %v189_v26 }
  0xdd   :  { %v191_v28 = vmul.f32 0.5, %v190_v27 }
  0xdf   :  { %v192_v29 = vsub.f32 1.5, %v191_v28 }
  0xe1   :  { %v193_v31 = vmul.f32 %v368_v25, %v192_v29 }
  0xe3   :  { %v197_v32 = vsel %vm196_vm7, %v368_v25, %v193_v31  ;;  %v364_v31 = vld [vmem:[%s602_s9] ss:$0 sm:$0xff] }
  0xe4   :  { %v198_v33 = vmul.f32 %v197_v32, %v166_v30 }
  0xe6   :  { %v199_v35 = vmul.f32 %v198_v33, %v176_v2  ;;  %v202_v36 = vperm.slane %v198_v33, 0  ;;  %v295_v2 = vld [vmem:[#allocation5 + $0x30] sm:$0xff] }
  0xe7   :  { %318 = vmatpush.msra.mxu3 %v295_v2 }
  0xe8   :  { %v200_v37 = vsub.f32 %v167_v34, %v199_v35  ;;  %v204_v38 = vmul.f32 %v202_v36, %v507_v52 }
  0xe9   :  { %319 = vmatpush.msra.mxu3 %v294_v4 }
  0xea   :  { %v206_v39 = vperm.slane %v200_v37, 0 }
  0xeb   :  { %320 = vmatpush.msra.mxu3 %v293_v6 }
  0xec   :  { %v208_v40 = vadd.f32 %v206_v39, %v204_v38 }
  0xed   :  { %321 = vmatpush.msra.mxu3 %v292_v8 }
  0xee   :  { %v209_v41 = vmax.f32 %v208_v40, 0.0 }
  0xef   :  { %322 = vmatpush.msra.mxu3 %v291_v9 }
  0xf0   :  { %242 = vmatmul.f32.vlgmr.msra.gmra.mxu2 %v209_v41 }
  0xf1   :  { %323 = vmatpush.msra.mxu3 %v290_v11 }
 0x173   :  { %v572_v42 = vpop.f32.mrf.mxu2 }
 0x174   :  { %v248_v43 = vmul.f32 %v505_v50, %v572_v42 }
 0x176   :  { %v249_v44 = vrot.slane %v248_v43, 4 }
 0x178   :  { %v250_v45 = vadd.f32 %v249_v44, %v248_v43 }
 0x17a   :  { %v251_v47 = vrot.slane %v250_v45, 2 }
 0x17c   :  { %v252_v49 = vadd.f32 %v251_v47, %v250_v45 }
 0x17e   :  { %v253_v52 = vrot.slane %v252_v49, 1 }
 0x180   :  { %v254_v54 = vadd.f32 %v253_v52, %v252_v49 }
 0x182   :  { %v255_v56 = vmul.f32 %v254_v54, %v523_v63 }
 0x184   :  { %v256_v58 = vsub.f32 %v572_v42, %v255_v56 }
 0x186   :  { %v257_v60 = vmul.f32 %v256_v58, %v256_v58 }
 0x188   :  { %v258_v62 = vmul.f32 %v505_v50, %v257_v60  ;;  %v289_v50 = vld [vmem:[#allocation5] sm:$0xff] }
 0x189   :  { %324 = vmatpush.msra.mxu3 %v289_v50 }
 0x18a   :  { %v259_v1 = vrot.slane %v258_v62, 4 }
 0x18c   :  { %v260_v3 = vadd.f32 %v259_v1, %v258_v62 }
 0x18e   :  { %v261_v5 = vrot.slane %v260_v3, 2 }
 0x190   :  { %v262_v7 = vadd.f32 %v261_v5, %v260_v3 }
 0x192   :  { %v263_v10 = vrot.slane %v262_v7, 1 }
 0x194   :  { %v264_v12 = vadd.f32 %v263_v10, %v262_v7 }
 0x196   :  { %v265_v13 = vmul.f32 %v264_v12, %v523_v63  ;;  %v247_v63 = vld [vmem:[%s600_s7] sm:$0x1] }
 0x198   :  { %v266_v14 = vadd.f32 1e-05, %v265_v13 }
 0x19a   :  { %369 = vrsqrt.f32 %v266_v14  ;;  %vm273_vm9 = vweird.f32 %v266_v14 }
 0x1a0   :  { %v370_v15 = vpop.eup %369 }
 0x1a1   :  { %v268_v16 = vmul.f32 %v370_v15, %v266_v14  ;;  %vm274_vm8 = vweird.f32 %v370_v15 }
 0x1a2   :  { %vm275_vm10 = vmor %vm273_vm9, %vm274_vm8 }
 0x1a3   :  { %v269_v17 = vmul.f32 %v370_v15, %v268_v16 }
 0x1a5   :  { %v270_v18 = vmul.f32 0.5, %v269_v17 }
 0x1a7   :  { %v271_v19 = vsub.f32 1.5, %v270_v18 }
 0x1a9   :  { %v272_v21 = vmul.f32 %v370_v15, %v271_v19 }
 0x1ab   :  { %v276_v22 = vsel %vm275_vm10, %v370_v15, %v272_v21 }
 0x1ac   :  { %v277_v23 = vmul.f32 %v276_v22, %v246_v20 }
 0x1ae   :  { %v278_v24 = vmul.f32 %v277_v23, %v255_v56  ;;  %v281_v25 = vperm.slane %v277_v23, 0 }
 0x1b0   :  { %v279_v26 = vsub.f32 %v247_v63, %v278_v24  ;;  %v283_v27 = vmul.f32 %v281_v25, %v572_v42 }
 0x1b2   :  { %v285_v28 = vperm.slane %v279_v26, 0 }
 0x1b4   :  { %v287_v29 = vadd.f32 %v285_v28, %v283_v27 }
 0x1b6   :  { %v288_v30 = vmax.f32 %v287_v29, 0.0 }
 0x1b8   :  { %325 = vmatmul.f32.vlgmr.msra.gmra.mxu3 %v288_v30 }
 0x23b   :  { %v326_v32 = vpop.f32.mrf.mxu3 }
 0x23c   :  { %v327_v33 = vadd.f32 %v364_v31, %v326_v32 }
 0x23e   :  { %v356_v34 = vmul.f32 -1.442695, %v327_v33 }
 0x240   :  { %371 = vpow2.f32 %v356_v34 }
 0x246   :  { %v372_v35 = vpop.eup %371 }
 0x247   :  { %v332_v36 = vadd.f32 1.0, %v372_v35 }
 0x249   :  { %373 = vrcp.f32 %v332_v36  ;;  %v344_v40 = vand.u32 2147483648, %v332_v36  ;;  %v342_v42 = vand.u32 2147483647, %v332_v36  ;;  %vm338_vm12 = vweird.f32 %v332_v36 }
 0x24b   :  { %v345_v44 = vor.u32 1.1754944e-38, %v344_v40  ;;  %vm343_vm14 = vcmp.eq.f32.partialorder %v342_v42, 8.507059e+37 }
 0x24f   :  { %v374_v37 = vpop.eup %373 }
 0x250   :  { %v334_v38 = vmul.f32 %v374_v37, %v332_v36  ;;  %vm339_vm11 = vweird.f32 %v374_v37 }
 0x251   :  { %vm340_vm13 = vmor %vm338_vm12, %vm339_vm11 }
 0x252   :  { %v335_v39 = vsub.f32 1.0, %v334_v38 }
 0x254   :  { %v336_v41 = vmul.f32 %v374_v37, %v335_v39 }
 0x256   :  { %v337_v43 = vadd.f32 %v374_v37, %v336_v41 }
 0x258   :  { %v341_v45 = vsel %vm340_vm13, %v374_v37, %v337_v43 }
 0x259   :  { %v346_v46 = vsel %vm343_vm14, %v345_v44, %v341_v45 }
 0x25a   :  { %348 = vst [vmem:[%s603_s10] sm:$0xff] %v346_v46 }
 0x25b   :  { %353 = vsyncpa [#allocation4], 1 }
 0x25c   :  { %354 = vsyncpa [#allocation6], 1 }

</bundles_post_ra>
